<compile_context>
chip_gen: v7x
topology: tpu7x:2x2x1
jax: 0.10.0
libtpu: 0.0.40
codegen_flags: <defaults>
</compile_context>

<pallas_src>
import functools

import jax
import jax.numpy as jnp
from jax.experimental import pallas as pl
from jax.experimental.pallas import tpu as pltpu


def _resnet_block_kernel(x_ref, w1_ref, b1_ref, w2_ref, b2_ref, out_ref,
                         patch_ref, *, H, W):
    # x_ref    : (1, C, H*W)  one batch element, channels on sublanes,
    #                         flattened spatial on lanes (lane-dense)
    # w*_ref   : (C, 9*C)     conv weights, w2d[co, (ky*3+kx)*C + ci]
    # b*_ref   : (C, 1)       conv biases
    # out_ref  : (1, C, H*W)
    # patch_ref: (9*C, H*W)   VMEM scratch: im2col patch matrix (reused by both convs)
    C = x_ref.shape[1]
    HW = H * W

    x = x_ref[0]  # (C, HW) f32

    # Column index of every flattened spatial position (computed once, reused).
    col = jax.lax.broadcasted_iota(jnp.int32, (C, HW), 1) % W
    ok_left = col >= 1         # source column col-1 exists   (dx == -1)
    ok_right = col < (W - 1)   # source column col+1 exists   (dx == +1)

    def shift_flat(a, s):
        # result[c, p] = a[c, p + s] if 0 <= p + s < HW else 0  (zero-fill shift)
        if s == 0:
            return a
        if s > 0:
            pad = jnp.zeros((C, s), a.dtype)
            return jnp.concatenate([a[:, s:], pad], axis=1)
        pad = jnp.zeros((C, -s), a.dtype)
        return jnp.concatenate([pad, a[:, :s]], axis=1)

    def conv3x3(a, w_ref_, b_ref_):
        # im2col: 9 shifted views of `a` stacked into the (9*C, HW) patch
        # matrix, then ONE MXU matmul (C, 9*C) x (9*C, HW) + bias.
        for ky in range(3):
            dy = ky - 1
            for kx in range(3):
                dx = kx - 1
                t = shift_flat(a, dy * W + dx)
                if dx == -1:
                    t = jnp.where(ok_left, t, 0.0)
                elif dx == 1:
                    t = jnp.where(ok_right, t, 0.0)
                tap = ky * 3 + kx
                patch_ref[tap * C:(tap + 1) * C, :] = t
        return jnp.dot(w_ref_[...], patch_ref[...],
                       preferred_element_type=jnp.float32) + b_ref_[...]

    # ---- conv1 + ELU(alpha=0.1) ------------------------------------------
    h = conv3x3(x, w1_ref, b1_ref)
    h = jnp.where(h > 0, h, 0.1 * (jnp.exp(h) - 1.0))

    # ---- conv2 + InstanceNorm2d (affine=False, eps=1e-5) + ReLU ----------
    h = conv3x3(h, w2_ref, b2_ref)
    mean = jnp.mean(h, axis=1, keepdims=True)                 # (C, 1) lane reduce
    var = jnp.mean((h - mean) ** 2, axis=1, keepdims=True)
    h = (h - mean) * jax.lax.rsqrt(var + 1e-5)

    # ---- ReLU + residual ---------------------------------------------------
    out_ref[0] = x + jnp.maximum(h, 0.0)


def resnet_block_pallas(x_nchw, w1, b1, w2, b2):
    """x_nchw: (N, C, H, W) f32; w*: (C, C, 3, 3) OIHW; b*: (C,)."""
    N, C, H, W = x_nchw.shape
    HW = H * W

    # No transposes / spatial padding in the wrapper: only free reshapes.
    x_flat = x_nchw.reshape(N, C, HW)

    # OIHW -> (C_out, 9*C_in), index k = (ky*3 + kx)*C_in + ci  (tiny, one-off).
    w1_2d = jnp.transpose(w1, (0, 2, 3, 1)).reshape(C, 9 * C)
    w2_2d = jnp.transpose(w2, (0, 2, 3, 1)).reshape(C, 9 * C)
    b1_2d = b1.reshape(C, 1)
    b2_2d = b2.reshape(C, 1)

    kernel = functools.partial(_resnet_block_kernel, H=H, W=W)

    out_flat = pl.pallas_call(
        kernel,
        out_shape=jax.ShapeDtypeStruct((N, C, HW), jnp.float32),
        grid_spec=pltpu.PrefetchScalarGridSpec(
            num_scalar_prefetch=0,
            grid=(N,),
            in_specs=[
                pl.BlockSpec((1, C, HW), lambda n: (n, 0, 0)),
                pl.BlockSpec((C, 9 * C), lambda n: (0, 0)),
                pl.BlockSpec((C, 1), lambda n: (0, 0)),
                pl.BlockSpec((C, 9 * C), lambda n: (0, 0)),
                pl.BlockSpec((C, 1), lambda n: (0, 0)),
            ],
            out_specs=pl.BlockSpec((1, C, HW), lambda n: (n, 0, 0)),
            scratch_shapes=[pltpu.VMEM((9 * C, HW), jnp.float32)],
        ),
        compiler_params=pltpu.CompilerParams(
            dimension_semantics=("parallel",)),
    )(x_flat, w1_2d, b1_2d, w2_2d, b2_2d)

    return out_flat.reshape(N, C, H, W)


# ---------------------------------------------------------------------------
# Pure-JAX reference for validation.
# ---------------------------------------------------------------------------
def resnet_block_ref(x_nchw, w1, b1, w2, b2):
    dn = jax.lax.conv_dimension_numbers(x_nchw.shape, w1.shape,
                                        ("NCHW", "OIHW", "NCHW"))
    h = jax.lax.conv_general_dilated(x_nchw, w1, (1, 1), ((1, 1), (1, 1)),
                                     dimension_numbers=dn)
    h = h + b1.reshape(1, -1, 1, 1)
    h = jnp.where(h > 0, h, 0.1 * (jnp.exp(h) - 1.0))        # ELU(alpha=0.1)
    h = jax.lax.conv_general_dilated(h, w2, (1, 1), ((1, 1), (1, 1)),
                                     dimension_numbers=dn)
    h = h + b2.reshape(1, -1, 1, 1)
    mean = jnp.mean(h, axis=(2, 3), keepdims=True)
    var = jnp.mean((h - mean) ** 2, axis=(2, 3), keepdims=True)
    h = (h - mean) * jax.lax.rsqrt(var + 1e-5)               # InstanceNorm2d
    h = jnp.maximum(h, 0.0)                                   # ReLU
    return x_nchw + h


if __name__ == "__main__":
    N, C, H, W = 2, 4, 16, 16
    key = jax.random.PRNGKey(0)
    kx, kw1, kb1, kw2, kb2 = jax.random.split(key, 5)

    x = jax.random.normal(kx, (N, C, H, W), jnp.float32)
    fan_in = C * 3 * 3
    w1 = jax.random.normal(kw1, (C, C, 3, 3), jnp.float32) / jnp.sqrt(fan_in)
    b1 = jax.random.normal(kb1, (C,), jnp.float32) * 0.1
    w2 = jax.random.normal(kw2, (C, C, 3, 3), jnp.float32) / jnp.sqrt(fan_in)
    b2 = jax.random.normal(kb2, (C,), jnp.float32) * 0.1

    out = jax.block_until_ready(resnet_block_pallas(x, w1, b1, w2, b2))
    ref = jax.block_until_ready(resnet_block_ref(x, w1, b1, w2, b2))

    assert out.shape == (N, C, H, W)
    assert jnp.allclose(out, ref, atol=1e-4, rtol=1e-4), \
        f"max diff {jnp.max(jnp.abs(out - ref))}"
    print("KERNEL_OK")
</pallas_src>

<mosaic_0001>
module attributes {stable_mosaic.version = 11 : i64} {
  func.func @_resnet_block_kernel(%arg0: i32, %arg1: memref<1x4x256xf32, #tpu.memory_space<vmem>>, %arg2: memref<4x36xf32, #tpu.memory_space<vmem>>, %arg3: memref<4x1xf32, #tpu.memory_space<vmem>>, %arg4: memref<4x36xf32, #tpu.memory_space<vmem>>, %arg5: memref<4x1xf32, #tpu.memory_space<vmem>>, %arg6: memref<1x4x256xf32, #tpu.memory_space<vmem>>, %arg7: memref<36x256xf32, #tpu.memory_space<vmem>>) attributes {dimension_semantics = [#tpu.dimension_semantics<parallel>], iteration_bounds = array<i64: 2>, scalar_prefetch = 0 : i64, scratch_operands = 1 : i64, tpu.core_type = #tpu.core_type<tc>, window_params = [{transform_indices = @transform_0, window_bounds = array<i64: 1, 4, 256>}, {pipeline_mode = #tpu.pipeline_mode<synchronous>, transform_indices = @transform_1, window_bounds = array<i64: 4, 36>}, {pipeline_mode = #tpu.pipeline_mode<synchronous>, transform_indices = @transform_2, window_bounds = array<i64: 4, 1>}, {pipeline_mode = #tpu.pipeline_mode<synchronous>, transform_indices = @transform_3, window_bounds = array<i64: 4, 36>}, {pipeline_mode = #tpu.pipeline_mode<synchronous>, transform_indices = @transform_4, window_bounds = array<i64: 4, 1>}, {transform_indices = @transform_5, window_bounds = array<i64: 1, 4, 256>}]} {
    %c0 = arith.constant 0 : index
    %c0_0 = arith.constant 0 : index
    %c0_1 = arith.constant 0 : index
    %0 = vector.load %arg1[%c0, %c0_0, %c0_1] : memref<1x4x256xf32, #tpu.memory_space<vmem>>, vector<1x4x256xf32>
    %1 = vector.shape_cast %0 : vector<1x4x256xf32> to vector<4x256xf32>
    %2 = tpu.iota {dimensions = array<i32: 1>} : vector<4x256xi32>
    %c16_i32 = arith.constant 16 : i32
    %c0_i32 = arith.constant 0 : i32
    %3 = arith.cmpi eq, %c16_i32, %c0_i32 : i32
    %c1_i32 = arith.constant 1 : i32
    %4 = arith.select %3, %c1_i32, %c16_i32 : i32
    %5 = vector.broadcast %4 : i32 to vector<4x256xi32>
    %6 = arith.remsi %2, %5 : vector<4x256xi32>
    %c0_i32_2 = arith.constant 0 : i32
    %7 = vector.broadcast %c0_i32_2 : i32 to vector<4x256xi32>
    %8 = arith.cmpi ne, %6, %7 : vector<4x256xi32>
    %c0_i32_3 = arith.constant 0 : i32
    %9 = vector.broadcast %c0_i32_3 : i32 to vector<4x256xi32>
    %10 = arith.cmpi slt, %6, %9 : vector<4x256xi32>
    %c0_i32_4 = arith.constant 0 : i32
    %11 = arith.cmpi slt, %4, %c0_i32_4 : i32
    %12 = vector.broadcast %11 : i1 to vector<4x256xi1>
    %13 = vector.broadcast %12 : vector<4x256xi1> to vector<4x256xi1>
    %14 = arith.xori %10, %13 : vector<4x256xi1>
    %15 = arith.andi %14, %8 : vector<4x256xi1>
    %16 = vector.broadcast %4 : i32 to vector<4x256xi32>
    %17 = arith.addi %6, %16 : vector<4x256xi32>
    %18 = arith.select %15, %17, %6 : vector<4x256xi1>, vector<4x256xi32>
    %c1_i32_5 = arith.constant 1 : i32
    %19 = vector.broadcast %c1_i32_5 : i32 to vector<4x256xi32>
    %20 = arith.cmpi sge, %18, %19 : vector<4x256xi32>
    %c15_i32 = arith.constant 15 : i32
    %21 = vector.broadcast %c15_i32 : i32 to vector<4x256xi32>
    %22 = arith.cmpi slt, %18, %21 : vector<4x256xi32>
    %cst = arith.constant 0.000000e+00 : f32
    %23 = vector.broadcast %cst : f32 to vector<4x17xf32>
    %24 = vector.extract_strided_slice %1 {offsets = [0, 0], sizes = [4, 239], strides = [1, 1]} : vector<4x256xf32> to vector<4x239xf32>
    %25 = tpu.concatenate %23, %24 in 1 : vector<4x17xf32>, vector<4x239xf32> -> vector<4x256xf32>
    %cst_6 = arith.constant 0.000000e+00 : f32
    %26 = vector.broadcast %cst_6 : f32 to vector<4x256xf32>
    %27 = arith.select %20, %25, %26 : vector<4x256xi1>, vector<4x256xf32>
    %c0_7 = arith.constant 0 : index
    %c0_8 = arith.constant 0 : index
    %28 = vector.load %arg7[%c0_7, %c0_8] : memref<36x256xf32, #tpu.memory_space<vmem>>, vector<4x256xf32>
    tpu.vector_store %arg7[%c0_7, %c0_8], %27 {strides = array<i32>} : memref<36x256xf32, #tpu.memory_space<vmem>>, vector<4x256xf32>,
    %cst_9 = arith.constant 0.000000e+00 : f32
    %29 = vector.broadcast %cst_9 : f32 to vector<4x16xf32>
    %30 = vector.extract_strided_slice %1 {offsets = [0, 0], sizes = [4, 240], strides = [1, 1]} : vector<4x256xf32> to vector<4x240xf32>
    %31 = tpu.concatenate %29, %30 in 1 : vector<4x16xf32>, vector<4x240xf32> -> vector<4x256xf32>
    %c4 = arith.constant 4 : index
    %c0_10 = arith.constant 0 : index
    %32 = vector.load %arg7[%c4, %c0_10] : memref<36x256xf32, #tpu.memory_space<vmem>>, vector<4x256xf32>
    tpu.vector_store %arg7[%c4, %c0_10], %31 {strides = array<i32>} : memref<36x256xf32, #tpu.memory_space<vmem>>, vector<4x256xf32>,
    %cst_11 = arith.constant 0.000000e+00 : f32
    %33 = vector.broadcast %cst_11 : f32 to vector<4x15xf32>
    %34 = vector.extract_strided_slice %1 {offsets = [0, 0], sizes = [4, 241], strides = [1, 1]} : vector<4x256xf32> to vector<4x241xf32>
    %35 = tpu.concatenate %33, %34 in 1 : vector<4x15xf32>, vector<4x241xf32> -> vector<4x256xf32>
    %cst_12 = arith.constant 0.000000e+00 : f32
    %36 = vector.broadcast %cst_12 : f32 to vector<4x256xf32>
    %37 = arith.select %22, %35, %36 : vector<4x256xi1>, vector<4x256xf32>
    %c8 = arith.constant 8 : index
    %c0_13 = arith.constant 0 : index
    %38 = vector.load %arg7[%c8, %c0_13] : memref<36x256xf32, #tpu.memory_space<vmem>>, vector<4x256xf32>
    tpu.vector_store %arg7[%c8, %c0_13], %37 {strides = array<i32>} : memref<36x256xf32, #tpu.memory_space<vmem>>, vector<4x256xf32>,
    %cst_14 = arith.constant 0.000000e+00 : f32
    %39 = vector.broadcast %cst_14 : f32 to vector<4x1xf32>
    %40 = vector.extract_strided_slice %1 {offsets = [0, 0], sizes = [4, 255], strides = [1, 1]} : vector<4x256xf32> to vector<4x255xf32>
    %41 = tpu.concatenate %39, %40 in 1 : vector<4x1xf32>, vector<4x255xf32> -> vector<4x256xf32>
    %cst_15 = arith.constant 0.000000e+00 : f32
    %42 = vector.broadcast %cst_15 : f32 to vector<4x256xf32>
    %43 = arith.select %20, %41, %42 : vector<4x256xi1>, vector<4x256xf32>
    %c12 = arith.constant 12 : index
    %c0_16 = arith.constant 0 : index
    %44 = vector.load %arg7[%c12, %c0_16] : memref<36x256xf32, #tpu.memory_space<vmem>>, vector<4x256xf32>
    tpu.vector_store %arg7[%c12, %c0_16], %43 {strides = array<i32>} : memref<36x256xf32, #tpu.memory_space<vmem>>, vector<4x256xf32>,
    %c16 = arith.constant 16 : index
    %c0_17 = arith.constant 0 : index
    %45 = vector.load %arg7[%c16, %c0_17] : memref<36x256xf32, #tpu.memory_space<vmem>>, vector<4x256xf32>
    tpu.vector_store %arg7[%c16, %c0_17], %1 {strides = array<i32>} : memref<36x256xf32, #tpu.memory_space<vmem>>, vector<4x256xf32>,
    %cst_18 = arith.constant 0.000000e+00 : f32
    %46 = vector.broadcast %cst_18 : f32 to vector<4x1xf32>
    %47 = vector.extract_strided_slice %1 {offsets = [0, 1], sizes = [4, 255], strides = [1, 1]} : vector<4x256xf32> to vector<4x255xf32>
    %48 = tpu.concatenate %47, %46 in 1 : vector<4x255xf32>, vector<4x1xf32> -> vector<4x256xf32>
    %cst_19 = arith.constant 0.000000e+00 : f32
    %49 = vector.broadcast %cst_19 : f32 to vector<4x256xf32>
    %50 = arith.select %22, %48, %49 : vector<4x256xi1>, vector<4x256xf32>
    %c20 = arith.constant 20 : index
    %c0_20 = arith.constant 0 : index
    %51 = vector.load %arg7[%c20, %c0_20] : memref<36x256xf32, #tpu.memory_space<vmem>>, vector<4x256xf32>
    tpu.vector_store %arg7[%c20, %c0_20], %50 {strides = array<i32>} : memref<36x256xf32, #tpu.memory_space<vmem>>, vector<4x256xf32>,
    %cst_21 = arith.constant 0.000000e+00 : f32
    %52 = vector.broadcast %cst_21 : f32 to vector<4x15xf32>
    %53 = vector.extract_strided_slice %1 {offsets = [0, 15], sizes = [4, 241], strides = [1, 1]} : vector<4x256xf32> to vector<4x241xf32>
    %54 = tpu.concatenate %53, %52 in 1 : vector<4x241xf32>, vector<4x15xf32> -> vector<4x256xf32>
    %cst_22 = arith.constant 0.000000e+00 : f32
    %55 = vector.broadcast %cst_22 : f32 to vector<4x256xf32>
    %56 = arith.select %20, %54, %55 : vector<4x256xi1>, vector<4x256xf32>
    %c24 = arith.constant 24 : index
    %c0_23 = arith.constant 0 : index
    %57 = vector.load %arg7[%c24, %c0_23] : memref<36x256xf32, #tpu.memory_space<vmem>>, vector<4x256xf32>
    tpu.vector_store %arg7[%c24, %c0_23], %56 {strides = array<i32>} : memref<36x256xf32, #tpu.memory_space<vmem>>, vector<4x256xf32>,
    %cst_24 = arith.constant 0.000000e+00 : f32
    %58 = vector.broadcast %cst_24 : f32 to vector<4x16xf32>
    %59 = vector.extract_strided_slice %1 {offsets = [0, 16], sizes = [4, 240], strides = [1, 1]} : vector<4x256xf32> to vector<4x240xf32>
    %60 = tpu.concatenate %59, %58 in 1 : vector<4x240xf32>, vector<4x16xf32> -> vector<4x256xf32>
    %c28 = arith.constant 28 : index
    %c0_25 = arith.constant 0 : index
    %61 = vector.load %arg7[%c28, %c0_25] : memref<36x256xf32, #tpu.memory_space<vmem>>, vector<4x256xf32>
    tpu.vector_store %arg7[%c28, %c0_25], %60 {strides = array<i32>} : memref<36x256xf32, #tpu.memory_space<vmem>>, vector<4x256xf32>,
    %cst_26 = arith.constant 0.000000e+00 : f32
    %62 = vector.broadcast %cst_26 : f32 to vector<4x17xf32>
    %63 = vector.extract_strided_slice %1 {offsets = [0, 17], sizes = [4, 239], strides = [1, 1]} : vector<4x256xf32> to vector<4x239xf32>
    %64 = tpu.concatenate %63, %62 in 1 : vector<4x239xf32>, vector<4x17xf32> -> vector<4x256xf32>
    %cst_27 = arith.constant 0.000000e+00 : f32
    %65 = vector.broadcast %cst_27 : f32 to vector<4x256xf32>
    %66 = arith.select %22, %64, %65 : vector<4x256xi1>, vector<4x256xf32>
    %c32 = arith.constant 32 : index
    %c0_28 = arith.constant 0 : index
    %67 = vector.load %arg7[%c32, %c0_28] : memref<36x256xf32, #tpu.memory_space<vmem>>, vector<4x256xf32>
    tpu.vector_store %arg7[%c32, %c0_28], %66 {strides = array<i32>} : memref<36x256xf32, #tpu.memory_space<vmem>>, vector<4x256xf32>,
    %c0_29 = arith.constant 0 : index
    %c0_30 = arith.constant 0 : index
    %68 = vector.load %arg2[%c0_29, %c0_30] : memref<4x36xf32, #tpu.memory_space<vmem>>, vector<4x36xf32>
    %c0_31 = arith.constant 0 : index
    %c0_32 = arith.constant 0 : index
    %69 = vector.load %arg7[%c0_31, %c0_32] : memref<36x256xf32, #tpu.memory_space<vmem>>, vector<36x256xf32>
    %cst_33 = arith.constant dense<0.000000e+00> : vector<4x256xf32>
    %70 = tpu.matmul %68, %69, %cst_33 {dimension_numbers = #tpu.dot_dimension_numbers<[1], [0], [0], [1], [0, 0, 1, 1], [], []>} : vector<4x36xf32>, vector<36x256xf32>, vector<4x256xf32> -> vector<4x256xf32>
    %c0_34 = arith.constant 0 : index
    %c0_35 = arith.constant 0 : index
    %71 = vector.load %arg3[%c0_34, %c0_35] : memref<4x1xf32, #tpu.memory_space<vmem>>, vector<4x1xf32>
    %72 = vector.broadcast %71 : vector<4x1xf32> to vector<4x256xf32>
    %73 = arith.addf %70, %72 : vector<4x256xf32>
    %cst_36 = arith.constant 0.000000e+00 : f32
    %74 = vector.broadcast %cst_36 : f32 to vector<4x256xf32>
    %75 = arith.cmpf ogt, %73, %74 : vector<4x256xf32>
    %76 = math.exp %73 : vector<4x256xf32>
    %cst_37 = arith.constant 1.000000e+00 : f32
    %77 = vector.broadcast %cst_37 : f32 to vector<4x256xf32>
    %78 = arith.subf %76, %77 : vector<4x256xf32>
    %cst_38 = arith.constant 1.000000e-01 : f32
    %79 = vector.broadcast %cst_38 : f32 to vector<4x256xf32>
    %80 = arith.mulf %79, %78 : vector<4x256xf32>
    %81 = arith.select %75, %73, %80 : vector<4x256xi1>, vector<4x256xf32>
    %cst_39 = arith.constant 0.000000e+00 : f32
    %82 = vector.broadcast %cst_39 : f32 to vector<4x17xf32>
    %83 = vector.extract_strided_slice %81 {offsets = [0, 0], sizes = [4, 239], strides = [1, 1]} : vector<4x256xf32> to vector<4x239xf32>
    %84 = tpu.concatenate %82, %83 in 1 : vector<4x17xf32>, vector<4x239xf32> -> vector<4x256xf32>
    %cst_40 = arith.constant 0.000000e+00 : f32
    %85 = vector.broadcast %cst_40 : f32 to vector<4x256xf32>
    %86 = arith.select %20, %84, %85 : vector<4x256xi1>, vector<4x256xf32>
    %c0_41 = arith.constant 0 : index
    %c0_42 = arith.constant 0 : index
    %87 = vector.load %arg7[%c0_41, %c0_42] : memref<36x256xf32, #tpu.memory_space<vmem>>, vector<4x256xf32>
    tpu.vector_store %arg7[%c0_41, %c0_42], %86 {strides = array<i32>} : memref<36x256xf32, #tpu.memory_space<vmem>>, vector<4x256xf32>,
    %cst_43 = arith.constant 0.000000e+00 : f32
    %88 = vector.broadcast %cst_43 : f32 to vector<4x16xf32>
    %89 = vector.extract_strided_slice %81 {offsets = [0, 0], sizes = [4, 240], strides = [1, 1]} : vector<4x256xf32> to vector<4x240xf32>
    %90 = tpu.concatenate %88, %89 in 1 : vector<4x16xf32>, vector<4x240xf32> -> vector<4x256xf32>
    %c4_44 = arith.constant 4 : index
    %c0_45 = arith.constant 0 : index
    %91 = vector.load %arg7[%c4_44, %c0_45] : memref<36x256xf32, #tpu.memory_space<vmem>>, vector<4x256xf32>
    tpu.vector_store %arg7[%c4_44, %c0_45], %90 {strides = array<i32>} : memref<36x256xf32, #tpu.memory_space<vmem>>, vector<4x256xf32>,
    %cst_46 = arith.constant 0.000000e+00 : f32
    %92 = vector.broadcast %cst_46 : f32 to vector<4x15xf32>
    %93 = vector.extract_strided_slice %81 {offsets = [0, 0], sizes = [4, 241], strides = [1, 1]} : vector<4x256xf32> to vector<4x241xf32>
    %94 = tpu.concatenate %92, %93 in 1 : vector<4x15xf32>, vector<4x241xf32> -> vector<4x256xf32>
    %cst_47 = arith.constant 0.000000e+00 : f32
    %95 = vector.broadcast %cst_47 : f32 to vector<4x256xf32>
    %96 = arith.select %22, %94, %95 : vector<4x256xi1>, vector<4x256xf32>
    %c8_48 = arith.constant 8 : index
    %c0_49 = arith.constant 0 : index
    %97 = vector.load %arg7[%c8_48, %c0_49] : memref<36x256xf32, #tpu.memory_space<vmem>>, vector<4x256xf32>
    tpu.vector_store %arg7[%c8_48, %c0_49], %96 {strides = array<i32>} : memref<36x256xf32, #tpu.memory_space<vmem>>, vector<4x256xf32>,
    %cst_50 = arith.constant 0.000000e+00 : f32
    %98 = vector.broadcast %cst_50 : f32 to vector<4x1xf32>
    %99 = vector.extract_strided_slice %81 {offsets = [0, 0], sizes = [4, 255], strides = [1, 1]} : vector<4x256xf32> to vector<4x255xf32>
    %100 = tpu.concatenate %98, %99 in 1 : vector<4x1xf32>, vector<4x255xf32> -> vector<4x256xf32>
    %cst_51 = arith.constant 0.000000e+00 : f32
    %101 = vector.broadcast %cst_51 : f32 to vector<4x256xf32>
    %102 = arith.select %20, %100, %101 : vector<4x256xi1>, vector<4x256xf32>
    %c12_52 = arith.constant 12 : index
    %c0_53 = arith.constant 0 : index
    %103 = vector.load %arg7[%c12_52, %c0_53] : memref<36x256xf32, #tpu.memory_space<vmem>>, vector<4x256xf32>
    tpu.vector_store %arg7[%c12_52, %c0_53], %102 {strides = array<i32>} : memref<36x256xf32, #tpu.memory_space<vmem>>, vector<4x256xf32>,
    %c16_54 = arith.constant 16 : index
    %c0_55 = arith.constant 0 : index
    %104 = vector.load %arg7[%c16_54, %c0_55] : memref<36x256xf32, #tpu.memory_space<vmem>>, vector<4x256xf32>
    tpu.vector_store %arg7[%c16_54, %c0_55], %81 {strides = array<i32>} : memref<36x256xf32, #tpu.memory_space<vmem>>, vector<4x256xf32>,
    %cst_56 = arith.constant 0.000000e+00 : f32
    %105 = vector.broadcast %cst_56 : f32 to vector<4x1xf32>
    %106 = vector.extract_strided_slice %81 {offsets = [0, 1], sizes = [4, 255], strides = [1, 1]} : vector<4x256xf32> to vector<4x255xf32>
    %107 = tpu.concatenate %106, %105 in 1 : vector<4x255xf32>, vector<4x1xf32> -> vector<4x256xf32>
    %cst_57 = arith.constant 0.000000e+00 : f32
    %108 = vector.broadcast %cst_57 : f32 to vector<4x256xf32>
    %109 = arith.select %22, %107, %108 : vector<4x256xi1>, vector<4x256xf32>
    %c20_58 = arith.constant 20 : index
    %c0_59 = arith.constant 0 : index
    %110 = vector.load %arg7[%c20_58, %c0_59] : memref<36x256xf32, #tpu.memory_space<vmem>>, vector<4x256xf32>
    tpu.vector_store %arg7[%c20_58, %c0_59], %109 {strides = array<i32>} : memref<36x256xf32, #tpu.memory_space<vmem>>, vector<4x256xf32>,
    %cst_60 = arith.constant 0.000000e+00 : f32
    %111 = vector.broadcast %cst_60 : f32 to vector<4x15xf32>
    %112 = vector.extract_strided_slice %81 {offsets = [0, 15], sizes = [4, 241], strides = [1, 1]} : vector<4x256xf32> to vector<4x241xf32>
    %113 = tpu.concatenate %112, %111 in 1 : vector<4x241xf32>, vector<4x15xf32> -> vector<4x256xf32>
    %cst_61 = arith.constant 0.000000e+00 : f32
    %114 = vector.broadcast %cst_61 : f32 to vector<4x256xf32>
    %115 = arith.select %20, %113, %114 : vector<4x256xi1>, vector<4x256xf32>
    %c24_62 = arith.constant 24 : index
    %c0_63 = arith.constant 0 : index
    %116 = vector.load %arg7[%c24_62, %c0_63] : memref<36x256xf32, #tpu.memory_space<vmem>>, vector<4x256xf32>
    tpu.vector_store %arg7[%c24_62, %c0_63], %115 {strides = array<i32>} : memref<36x256xf32, #tpu.memory_space<vmem>>, vector<4x256xf32>,
    %cst_64 = arith.constant 0.000000e+00 : f32
    %117 = vector.broadcast %cst_64 : f32 to vector<4x16xf32>
    %118 = vector.extract_strided_slice %81 {offsets = [0, 16], sizes = [4, 240], strides = [1, 1]} : vector<4x256xf32> to vector<4x240xf32>
    %119 = tpu.concatenate %118, %117 in 1 : vector<4x240xf32>, vector<4x16xf32> -> vector<4x256xf32>
    %c28_65 = arith.constant 28 : index
    %c0_66 = arith.constant 0 : index
    %120 = vector.load %arg7[%c28_65, %c0_66] : memref<36x256xf32, #tpu.memory_space<vmem>>, vector<4x256xf32>
    tpu.vector_store %arg7[%c28_65, %c0_66], %119 {strides = array<i32>} : memref<36x256xf32, #tpu.memory_space<vmem>>, vector<4x256xf32>,
    %cst_67 = arith.constant 0.000000e+00 : f32
    %121 = vector.broadcast %cst_67 : f32 to vector<4x17xf32>
    %122 = vector.extract_strided_slice %81 {offsets = [0, 17], sizes = [4, 239], strides = [1, 1]} : vector<4x256xf32> to vector<4x239xf32>
    %123 = tpu.concatenate %122, %121 in 1 : vector<4x239xf32>, vector<4x17xf32> -> vector<4x256xf32>
    %cst_68 = arith.constant 0.000000e+00 : f32
    %124 = vector.broadcast %cst_68 : f32 to vector<4x256xf32>
    %125 = arith.select %22, %123, %124 : vector<4x256xi1>, vector<4x256xf32>
    %c32_69 = arith.constant 32 : index
    %c0_70 = arith.constant 0 : index
    %126 = vector.load %arg7[%c32_69, %c0_70] : memref<36x256xf32, #tpu.memory_space<vmem>>, vector<4x256xf32>
    tpu.vector_store %arg7[%c32_69, %c0_70], %125 {strides = array<i32>} : memref<36x256xf32, #tpu.memory_space<vmem>>, vector<4x256xf32>,
    %c0_71 = arith.constant 0 : index
    %c0_72 = arith.constant 0 : index
    %127 = vector.load %arg4[%c0_71, %c0_72] : memref<4x36xf32, #tpu.memory_space<vmem>>, vector<4x36xf32>
    %c0_73 = arith.constant 0 : index
    %c0_74 = arith.constant 0 : index
    %128 = vector.load %arg7[%c0_73, %c0_74] : memref<36x256xf32, #tpu.memory_space<vmem>>, vector<36x256xf32>
    %cst_75 = arith.constant dense<0.000000e+00> : vector<4x256xf32>
    %129 = tpu.matmul %127, %128, %cst_75 {dimension_numbers = #tpu.dot_dimension_numbers<[1], [0], [0], [1], [0, 0, 1, 1], [], []>} : vector<4x36xf32>, vector<36x256xf32>, vector<4x256xf32> -> vector<4x256xf32>
    %c0_76 = arith.constant 0 : index
    %c0_77 = arith.constant 0 : index
    %130 = vector.load %arg5[%c0_76, %c0_77] : memref<4x1xf32, #tpu.memory_space<vmem>>, vector<4x1xf32>
    %131 = vector.broadcast %130 : vector<4x1xf32> to vector<4x256xf32>
    %132 = arith.addf %129, %131 : vector<4x256xf32>
    %cst_78 = arith.constant dense<0.000000e+00> : vector<4xf32>
    %133 = vector.multi_reduction <add>, %132, %cst_78 [1] : vector<4x256xf32> to vector<4xf32>
    %134 = vector.shape_cast %133 : vector<4xf32> to vector<4x1xf32>
    %cst_79 = arith.constant 2.560000e+02 : f32
    %135 = vector.broadcast %cst_79 : f32 to vector<4x1xf32>
    %136 = arith.divf %134, %135 : vector<4x1xf32>
    %137 = vector.broadcast %136 : vector<4x1xf32> to vector<4x256xf32>
    %138 = arith.subf %132, %137 : vector<4x256xf32>
    %139 = arith.mulf %138, %138 : vector<4x256xf32>
    %cst_80 = arith.constant dense<0.000000e+00> : vector<4xf32>
    %140 = vector.multi_reduction <add>, %139, %cst_80 [1] : vector<4x256xf32> to vector<4xf32>
    %141 = vector.shape_cast %140 : vector<4xf32> to vector<4x1xf32>
    %cst_81 = arith.constant 2.560000e+02 : f32
    %142 = vector.broadcast %cst_81 : f32 to vector<4x1xf32>
    %143 = arith.divf %141, %142 : vector<4x1xf32>
    %144 = vector.broadcast %136 : vector<4x1xf32> to vector<4x256xf32>
    %145 = arith.subf %132, %144 : vector<4x256xf32>
    %cst_82 = arith.constant 9.99999974E-6 : f32
    %146 = vector.broadcast %cst_82 : f32 to vector<4x1xf32>
    %147 = arith.addf %143, %146 : vector<4x1xf32>
    %148 = math.rsqrt %147 : vector<4x1xf32>
    %149 = vector.broadcast %148 : vector<4x1xf32> to vector<4x256xf32>
    %150 = arith.mulf %145, %149 : vector<4x256xf32>
    %cst_83 = arith.constant 0.000000e+00 : f32
    %151 = vector.broadcast %cst_83 : f32 to vector<4x256xf32>
    %152 = arith.maximumf %150, %151 : vector<4x256xf32>
    %153 = arith.addf %1, %152 : vector<4x256xf32>
    %c0_84 = arith.constant 0 : index
    %c0_85 = arith.constant 0 : index
    %c0_86 = arith.constant 0 : index
    %154 = vector.load %arg6[%c0_84, %c0_85, %c0_86] : memref<1x4x256xf32, #tpu.memory_space<vmem>>, vector<1x4x256xf32>
    %155 = vector.shape_cast %154 : vector<1x4x256xf32> to vector<4x256xf32>
    %156 = vector.shape_cast %153 : vector<4x256xf32> to vector<1x4x256xf32>
    tpu.vector_store %arg6[%c0_84, %c0_85, %c0_86], %156 {strides = array<i32>} : memref<1x4x256xf32, #tpu.memory_space<vmem>>, vector<1x4x256xf32>,
    return
  }
  func.func @transform_0(%arg0: i32) -> (i32, i32, i32) {
    %c0_i32 = arith.constant 0 : i32
    %c0_i32_0 = arith.constant 0 : i32
    %c0_i32_1 = arith.constant 0 : i32
    return %arg0, %c0_i32, %c0_i32_0 : i32, i32, i32
  }
  func.func @transform_1(%arg0: i32) -> (i32, i32) {
    %c0_i32 = arith.constant 0 : i32
    %c0_i32_0 = arith.constant 0 : i32
    %c0_i32_1 = arith.constant 0 : i32
    return %c0_i32, %c0_i32_0 : i32, i32
  }
  func.func @transform_2(%arg0: i32) -> (i32, i32) {
    %c0_i32 = arith.constant 0 : i32
    %c0_i32_0 = arith.constant 0 : i32
    %c0_i32_1 = arith.constant 0 : i32
    return %c0_i32, %c0_i32_0 : i32, i32
  }
  func.func @transform_3(%arg0: i32) -> (i32, i32) {
    %c0_i32 = arith.constant 0 : i32
    %c0_i32_0 = arith.constant 0 : i32
    %c0_i32_1 = arith.constant 0 : i32
    return %c0_i32, %c0_i32_0 : i32, i32
  }
  func.func @transform_4(%arg0: i32) -> (i32, i32) {
    %c0_i32 = arith.constant 0 : i32
    %c0_i32_0 = arith.constant 0 : i32
    %c0_i32_1 = arith.constant 0 : i32
    return %c0_i32, %c0_i32_0 : i32, i32
  }
  func.func @transform_5(%arg0: i32) -> (i32, i32, i32) {
    %c0_i32 = arith.constant 0 : i32
    %c0_i32_0 = arith.constant 0 : i32
    %c0_i32_1 = arith.constant 0 : i32
    return %arg0, %c0_i32, %c0_i32_0 : i32, i32, i32
  }
}

</mosaic_0001>

<bundles_post_ra>
// kernel: tpu_custom_call.1
= control target key start
LH: loop header
LB: loop body
LE: loop exit
PB: predicated region body
PF: predicated region fallthrough
CT: control target
= control target key end

     0   :  { %10 = vsyncpa [#allocation4], 0  ;;  %s1409_s0 = inlined_call_operand.hbm [shape: f32[2,4,256], index: 0, kind: input, shape index: {}]   ;;  %s1410_s1 = inlined_call_operand.vmem [shape: f32[4,36], index: 1, kind: input, shape index: {}]   ;;  %s1411_s2 = inlined_call_operand.vmem [shape: f32[4,1], index: 2, kind: input, shape index: {}]   ;;  %s1412_s3 = inlined_call_operand.vmem [shape: f32[4,36], index: 3, kind: input, shape index: {}]   ;;  %s1413_s4 = inlined_call_operand.vmem [shape: f32[4,1], index: 4, kind: input, shape index: {}]   ;;  %s1414_s5 = inlined_call_operand.hbm [shape: f32[2,4,256], index: 5, kind: output, shape index: {}]  }
   0x1   :  { %12 = vsyncpa [#allocation4 + $0x1], 0 }
   0x2   :  { %13 = vsyncpa [#allocation5], 0 }
   0x3   :  { %15 = vsyncpa [#allocation5 + $0x1], 0  ;;  %s1080_s18 = smov 0   ;;  %s1082_s19 = smov 0  }
   0x4   :  { %s1084_s20 = smov 0   ;;  %s1086_s21 = smov 0  }
   0x5 LB: > { %s1101_s22 = sadd.s32 4294967295, %s1036_s21   ;;  %s836_s23 = sadd.s32 4294967294, %s1036_s21   ;;  %s1036_s21 = sphi %s1086_s21, %s1437_s21   ;;  %s1032_s20 = sphi %s1084_s20, %s1436_s20   ;;  %s1028_s19 = sphi %s1082_s19, %s1435_s19   ;;  %s1024_s18 = sphi %s1080_s18, %s1434_s18  }
   0x6   : > { %s1105_s24 = sadd.s32 1, %s1036_s21   ;;  %s28_s25 = sadd.s32 1, %s1032_s20 }
   0x7   : > { %s25_s26 = ssub.s32 %s1036_s21, %s1105_s24  ;;  %p35_p0 = scmp.ne.s32.totalorder %s1032_s20, %s1028_s19 }
   0x8   : > { %p26_p1 = scmp.eq.s32.totalorder %s25_s26, 0  ;;  %p36_p2 = scmp.eq.s32.totalorder %s1036_s21, 0 }
   0x9   : > { %p41_p3 = scmp.ne.s32.totalorder %s1028_s19, %s1024_s18  ;;  %p42_p4 = scmp.eq.s32.totalorder %s1101_s22, 0 }
   0xa   : > { %s1117_s27 = scalar_select %p26_p1, %s1032_s20, %s28_s25  }
   0xb   : > { %p1119_p5 = por %p36_p2, %p35_p0  ;;  %p1123_p6 = por %p42_p4, %p41_p3 }
   0xc   : > { %p149_p7 = scmp.eq.s32.totalorder %s1101_s22, 1  ;;  %p155_p8 = scmp.eq.s32.totalorder %s836_s23, 1 }
   0xd   : > { %p888_p10 = scmp.lt.s32.totalorder %s1036_s21, 2  ;;  %s187_s7 = sand.u32 1, %s1032_s20  }
   0xe   : > { %p1130_p11 = por %p149_p7, %p35_p0  ;;  %p1134_p12 = por %p155_p8, %p41_p3 }
   0xf   : > { %s858_s8 = sshll.u32 %s1036_s21, 7  ;;  %s839_s9 = sshll.u32 %s187_s7, 3 }
  0x10   : > { %s1418_s30 = scalar_select %p1130_p11, 1, 0 }
  0x11   : > { %s1419_s6 = scalar_select %p1134_p12, 1, 0 }
  0x12   : > { %s1143_s12 = scalar_lea.hbm %s1409_s0, %s858_s8  ;;  %s191_s13 = scalar_lea.vmem [#allocation3], %s839_s9 }
  0x13   : > { %s199_s14 = sshll.u32 %s191_s13, 4  ;;  %p1147_p13 = pnand %p888_p10, %p1119_p5  ;;  %s1151_s14 = int_to_ptr.vmem [resolvable:$true] %s199_s14 }
  0x14   : > { %s188_s16 = scalar_lea.sflag [#allocation4], %s187_s7  ;;  %s940_s17 = scalar_lea.hbm %s1143_s12, 128 }
  0x15   : > { %p941_p2 = scmp.ne.s32.totalorder %s1143_s12, %s940_s17  ;;  %p942_p3 = pneg %p1147_p13 }
  0x16   : > { %s945_s26 = scalar_lea.hbm %s1409_s0, 256  ;;  %p946_p5 = scmp.lt.u32.totalorder %s1143_s12, %s1409_s0 }
  0x17   : > { %p943_p4 = pnand %p942_p3, %p941_p2  ;;  %p947_p8 = scmp.lt.u32.totalorder %s945_s26, %s940_s17 }
  0x18   : > { %p949_p9 = scmp.lt.u32.totalorder %s940_s17, %s1143_s12 }
  0x19   : > { %p944_p7 = pneg %p943_p4  ;;  %p948_p10 = por %p947_p8, %p946_p5 }
  0x1b   : > { %p950_p0 = por %p949_p9, %p948_p10 }
  0x1d   : > { %p951_p1 = pnand %p950_p0, %p944_p7 }
  0x1f   : > { %954 = shalt.err (!%p951_p1)
}
  0x20   : > { %s955_s7 = scalar_lea.vmem %s1151_s14, 128  ;;  %s1038_s9 = smov [#allocation3]  }
  0x21   : > { %p956_p2 = scmp.ne.s32.totalorder %s1151_s14, %s955_s7  ;;  %s960_s10 = sshll.u32 %s1038_s9, 4  ;;  %s961_s10 = int_to_ptr.vmem [resolvable:$false] %s960_s10 }
  0x22   : > { %s962_s11 = scalar_lea.vmem %s961_s10, 256  ;;  %p963_p11 = scmp.lt.s32.totalorder %s1151_s14, %s961_s10 }
  0x23   : > { %p958_p4 = pnand %p956_p2, %p942_p3  ;;  %p964_p5 = scmp.lt.s32.totalorder %s962_s11, %s955_s7 }
  0x25   : > { %p959_p12 = pneg %p958_p4  ;;  %p965_p8 = por %p964_p5, %p963_p11 }
  0x27   : > { %p966_p9 = pnand %p965_p8, %p959_p12 }
  0x29   : > { %969 = shalt.err (!%p966_p9)
}
  0x2a   : > { %883 = dma.hbm_to_vmem [thread:$0]  (!%p1147_p13), %s1143_s12, 128, %s1151_s14, %s188_s16  }
  0x2b   : > { %p1421_p0 = scmp.lt.s32.totalorder %s1036_s21, 3  ;;  %p1422_p1 = scmp.ge.s32.totalorder %s1036_s21, 1 }
  0x2d   : > { %p205_p3 = pnand %p1422_p1, %p1421_p0 }
  0x2e   : > { %s1185_s13 = sand.u32 (!%p205_p3), 1, %s1028_s19  }
  0x2f   : > { %208 = sbr.rel (%p205_p3) target bundleno = 1153 (0x481), region = 40  ;;  %s843_s17 = sshll.u32 (!%p205_p3), %s1185_s13, 3 }
  0x30   : > { %s211_s23 = scalar_lea.sflag (!%p205_p3), [#allocation4], %s1185_s13  ;;  %s214_s15 = scalar_lea.vmem (!%p205_p3), [#allocation3], %s843_s17 }
  0x36   : > { %1015 = dma.done.wait (%p1123_p6), %s211_s23, 128  }
  0x37   : > { %1017 = vsyncadd (%p1123_p6), %s211_s23, 4294967168  ;;  %v1195_v0 = vld [vmem:[%s214_s15] sm:$0xff]  ;;  %s1039_s12 = smov 16   ;;  %s1040_s14 = smov 1   ;;  %v1047_v2 = vmov 0.0   ;;  %v1048_v4 = vmov 0   ;;  %v242_v5 = vlaneseq }
  0x38   : > { %288 = vrot.lane.b32.xlu1 %v1195_v0, %s1039_s12  ;;  %336 = vst [vmem:[#allocation2 + $0x20] sm:$0xf] %v1195_v0  ;;  %316 = vrot.lane.b32.xlu0 %v1195_v0, %s1040_s14  ;;  %v274_v1 = vcombine.high %v1195_v0, %v1195_v0  ;;  %s1041_s16 = smov 17   ;;  %s1042_s29 = smov 15   ;;  %v409_v3 = vld [vmem:[%s1411_s2] sm:$0xf] }
  0x39   : > { %s1043_s25 = smov 127   ;;  %s1044_s26 = smov 113   ;;  %490 = vmatprep.mubr.f32.mxu0 %v1047_v2  ;;  %715 = vmatprep.mubr.f32.mxu1 %v1047_v2  ;;  %v243_v6 = vand.u32 127, %v242_v5  ;;  %vm292_vm0 = vcmask 130048   ;;  %vm320_vm1 = vcmask 7168   ;;  %vm279_vm3 = vcmask 138240  }
  0x3a   : > { %337 = vst [vmem:[#allocation2 + $0x28] sm:$0xf] %v274_v1  ;;  %s1045_s28 = smov 112   ;;  %s1046_s8 = smov 111   ;;  %932 = vset.pattern.permute.xlu0 %v1048_v4  ;;  %vm307_vm5 = vcmask 121856   ;;  %vm342_vm8 = vcmask 1039360  }
  0x3b   : > { %v249_v7 = vand.u32 15, %v243_v6  ;;  %v244_v9 = vadd.s32 128, %v243_v6  ;;  %vm361_vm9 = vcmask 924672   ;;  %vm374_vm10 = vcmask 916480   ;;  %s752_s7 = scalar_lea.sflag [#allocation5], %s1185_s13  ;;  %p1431_p11 = scmp.ne.s32.totalorder %s1418_s30, 0 }
  0x3c   : > { %275 = vrot.lane.b32.xlu0 %v1195_v0, %s1041_s16  ;;  %290 = vrot.lane.b32.xlu1 %v274_v1, %s1039_s12  ;;  %vm389_vm11 = vcmask 908288   ;;  %vm419_vm12 = vcmask 1043456   ;;  %vm415_vm13 = vcmask 293888  }
  0x3d   : > { %vm1227_vm2 = vcmp.ge.s32.totalorder %v249_v7, 1  ;;  %v256_v17 = vand.u32 15, %v244_v9  ;;  %vm1249_vm6 = vcmp.lt.s32.totalorder %v249_v7, 15 }
  0x3f   : > { %vm1239_vm4 = vcmp.ge.s32.totalorder %v256_v17, 1  ;;  %vm1253_vm7 = vcmp.lt.s32.totalorder %v256_v17, 15 }
  0x40   : > { %277 = vrot.lane.b32.xlu1 %v274_v1, %s1041_s16  ;;  %318 = vrot.lane.b32.xlu0 %v274_v1, %s1040_s14 }
  0x44   : > { %305 = vrot.lane.b32.xlu1 %v274_v1, %s1042_s29  ;;  %303 = vrot.lane.b32.xlu0 %v1195_v0, %s1042_s29 }
  0x48   : > { %338 = vrot.lane.b32.xlu1 %v1195_v0, %s1043_s25  ;;  %340 = vrot.lane.b32.xlu0 %v274_v1, %s1043_s25 }
  0x4c   : > { %359 = vrot.lane.b32.xlu1 %v274_v1, %s1044_s26  ;;  %372 = vrot.lane.b32.xlu0 %v274_v1, %s1045_s28 }
  0x50   : > { %357 = vrot.lane.b32.xlu1 %v1195_v0, %s1044_s26  ;;  %370 = vrot.lane.b32.xlu0 %v1195_v0, %s1045_s28 }
  0x54   : > { %385 = vrot.lane.b32.xlu1 %v1195_v0, %s1046_s8  ;;  %387 = vrot.lane.b32.xlu0 %v274_v1, %s1046_s8 }
  0x58   : > { %412 = vperm.xlu0 %932, %v409_v3  }
  0xaa   : > { %v289_v10 = vpop.permute.xlu1 %288  ;;  %v317_v11 = vpop.permute.xlu0 %316 }
  0xab   : > { %v295_v12 = vsel %vm292_vm0, 0.0, %v289_v10  ;;  %v324_v13 = vsel %vm320_vm1, 0.0, %v317_v11 }
  0xac   : > { %v297_v14 = vrot.slane %v295_v12, 4  ;;  %v325_v15 = vsel %vm1227_vm2, %v324_v13, 0.0 }
  0xad   : > { %v329_v16 = vrot.slane %v325_v15, 4 }
  0xae   : > { %301 = vst [vmem:[#allocation2] sm:$0xf0] %v297_v14  ;;  %v276_v18 = vpop.permute.xlu0 %275  ;;  %v291_v19 = vpop.permute.xlu1 %290 }
  0xaf   : > { %333 = vst [vmem:[#allocation2 + $0x10] sm:$0xf0] %v329_v16  ;;  %v283_v20 = vsel %vm279_vm3, 0.0, %v276_v18  ;;  %v293_v21 = vsel %vm292_vm0, %v289_v10, %v291_v19 }
  0xb0   : > { %v284_v22 = vsel %vm1227_vm2, %v283_v20, 0.0  ;;  %v298_v23 = vrot.slane %v293_v21, 4 }
  0xb1   : > { %286 = vst [vmem:[#allocation2] sm:$0xf] %v284_v22 }
  0xb2   : > { %302 = vst [vmem:[#allocation2 + $0x8] sm:$0xf0] %v298_v23  ;;  %v278_v25 = vpop.permute.xlu1 %277  ;;  %v319_v26 = vpop.permute.xlu0 %318 }
  0xb3   : > { %v280_v27 = vsel %vm279_vm3, %v276_v18, %v278_v25  ;;  %v321_v28 = vsel %vm320_vm1, %v317_v11, %v319_v26  ;;  %v398_v18 = vld [vmem:[%s1410_s1] sm:$0xf] }
  0xb4   : > { %v285_v29 = vsel %vm1239_vm4, %v280_v27, 0.0  ;;  %v326_v30 = vsel %vm1239_vm4, %v321_v28, 0.0 }
  0xb5   : > { %287 = vst [vmem:[#allocation2 + $0x8] sm:$0xf] %v285_v29  ;;  %v330_v31 = vrot.slane %v326_v30, 4 }
  0xb6   : > { %v306_v34 = vpop.permute.xlu1 %305  ;;  %v304_v35 = vpop.permute.xlu0 %303 }
  0xb7   : > { %334 = vst [vmem:[#allocation2 + $0x18] sm:$0xf0] %v330_v31  ;;  %v308_v36 = vsel %vm307_vm5, %v304_v35, %v306_v34  ;;  %v311_v37 = vsel %vm307_vm5, 0.0, %v304_v35 }
  0xb8   : > { %v312_v38 = vsel %vm1249_vm6, %v311_v37, 0.0  ;;  %v313_v39 = vsel %vm1253_vm7, %v308_v36, 0.0  ;;  %v399_v52 = vld [vmem:[#allocation2] sm:$0xff] }
  0xb9   : > { %314 = vst [vmem:[#allocation2 + $0x10] sm:$0xf] %v312_v38  ;;  %315 = vst [vmem:[#allocation2 + $0x18] sm:$0xf] %v313_v39  ;;  %v636_v37 = vld [vmem:[%s1413_s4] sm:$0xf] }
  0xba   : > { %v339_v40 = vpop.permute.xlu1 %338  ;;  %v341_v41 = vpop.permute.xlu0 %340 }
  0xbb   : > { %v343_v42 = vsel %vm342_vm8, %v339_v40, %v341_v41  ;;  %v346_v43 = vsel %vm342_vm8, %v341_v41, 0.0 }
  0xbc   : > { %v347_v44 = vsel %vm1249_vm6, %v343_v42, 0.0  ;;  %v348_v45 = vsel %vm1253_vm7, %v346_v43, 0.0  ;;  %v400_v55 = vld [vmem:[#allocation2 + $0x8] sm:$0xff] }
  0xbd   : > { %v351_v46 = vrot.slane %v347_v44, 4  ;;  %v352_v47 = vrot.slane %v348_v45, 4 }
  0xbe   : > { %v360_v48 = vpop.permute.xlu1 %359  ;;  %v373_v49 = vpop.permute.xlu0 %372 }
  0xbf   : > { %355 = vst [vmem:[#allocation2 + $0x20] sm:$0xf0] %v351_v46  ;;  %356 = vst [vmem:[#allocation2 + $0x28] sm:$0xf0] %v352_v47  ;;  %v365_v50 = vsel %vm361_vm9, %v360_v48, 0.0  ;;  %v377_v51 = vsel %vm374_vm10, %v373_v49, 0.0 }
  0xc0   : > { %v367_v53 = vsel %vm1239_vm4, %v365_v50, 0.0  ;;  %v380_v54 = vrot.slane %v377_v51, 4  ;;  %v402_v56 = vld [vmem:[#allocation2 + $0x18] sm:$0xff]  ;;  %v401_v57 = vld [vmem:[#allocation2 + $0x10] sm:$0xff] }
  0xc1   : > { %369 = vst [vmem:[#allocation2 + $0x38] sm:$0xf] %v367_v53  ;;  %v860_v58 = vpack.c.bf16 %v402_v56, %v400_v55  ;;  %v862_v59 = vpack.c.bf16 %v401_v57, %v399_v52 }
  0xc2   : > { %384 = vst [vmem:[#allocation2 + $0x38] sm:$0xf0] %v380_v54  ;;  %v358_v60 = vpop.permute.xlu1 %357  ;;  %v371_v61 = vpop.permute.xlu0 %370 }
  0xc3   : > { %v362_v62 = vsel %vm361_vm9, %v358_v60, %v360_v48  ;;  %v375_v63 = vsel %vm374_vm10, %v371_v61, %v373_v49  ;;  %861 = vmatprep.subr.bf16.mxu0 %v860_v58 }
  0xc4   : > { %v366_v1 = vsel %vm1227_vm2, %v362_v62, 0.0  ;;  %v379_v2 = vrot.slane %v375_v63, 4  ;;  %863 = vmatpush1.bf16.msra.mxu0 %v862_v59 }
  0xc5   : > { %368 = vst [vmem:[#allocation2 + $0x30] sm:$0xf] %v366_v1 }
  0xc6   : > { %383 = vst [vmem:[#allocation2 + $0x30] sm:$0xf0] %v379_v2  ;;  %v386_v3 = vpop.permute.xlu1 %385  ;;  %v388_v4 = vpop.permute.xlu0 %387  ;;  %v404_v10 = vld [vmem:[#allocation2 + $0x28] sm:$0xff]  ;;  %v403_v13 = vld [vmem:[#allocation2 + $0x20] sm:$0xff] }
  0xc7   : > { %v390_v5 = vsel %vm389_vm11, %v386_v3, %v388_v4  ;;  %v393_v6 = vsel %vm389_vm11, %v388_v4, 0.0 }
  0xc8   : > { %v394_v7 = vsel %vm1249_vm6, %v390_v5, 0.0  ;;  %v395_v9 = vsel %vm1253_vm7, %v393_v6, 0.0 }
  0xc9   : > { %396 = vst [vmem:[#allocation2 + $0x40] sm:$0xf] %v394_v7  ;;  %397 = vst [vmem:[#allocation2 + $0x48] sm:$0xf] %v395_v9  ;;  %v406_v11 = vld [vmem:[#allocation2 + $0x38] sm:$0xff] }
  0xca   : > { %v864_v12 = vpack.c.bf16 %v406_v11, %v404_v10 }
  0xcc   : > { %865 = vmatprep.subr.bf16.mxu0 %v864_v12 }
  0xcd   : > { %v405_v14 = vld [vmem:[#allocation2 + $0x30] sm:$0xff] }
  0xce   : > { %v866_v15 = vpack.c.bf16 %v405_v14, %v403_v13 }
  0xd0   : > { %867 = vmatpush1.bf16.msra.mxu0 %v866_v15  ;;  %v408_v16 = vld [vmem:[#allocation2 + $0x48] sm:$0xf]  ;;  %v407_v17 = vld [vmem:[#allocation2 + $0x40] sm:$0xf] }
  0xd1   : > { %845 = vmatprep.subr.msk.mxu0 %vm419_vm12, %v408_v16 }
  0xd4   : > { %846 = vmatpush1.msk.msra.mxu0 %vm419_vm12, %v407_v17 }
  0xd5   : > { %847 = vmatmul.mubr.msk.f32.vlgmr.msra.gmra.mrb[0].mxu0 %vm415_vm13, %v398_v18 }
  0xd7   : > { %v413_v19 = vpop.permute.xlu0 %412 }
 0x1a8   : > { %v492_v20 = vpop.f32.mrb[0].mxu0 }
 0x1a9   : > { %v493_v21 = vadd.f32 %v492_v20, %v413_v19  ;;  %v494_v22 = vpop.f32.mrb[1].mxu0 }
 0x1aa   : > { %v495_v23 = vadd.f32 %v494_v22, %v413_v19 }
 0x1ab   : > { %v499_v25 = vmul.f32 1.442695, %v493_v21  ;;  %vm497_vm14 = vcmp.gt.f32.partialorder %v493_v21, 0.0 }
 0x1ac   : > { %v501_v26 = vmul.f32 1.442695, %v495_v23  ;;  %vm498_vm15 = vcmp.gt.f32.partialorder %v495_v23, 0.0 }
 0x1ad   : > { %934 = vpow2.f32 %v499_v25 }
 0x1ae   : > { %936 = vpow2.f32 %v501_v26 }
 0x1b7   : > { %v935_v27 = vpop.eup %934 }
 0x1b8   : > { %v937_v28 = vpop.eup %936  ;;  %v848_v29 = vadd.f32 -1.0, %v935_v27 }
 0x1b9   : > { %v849_v30 = vadd.f32 -1.0, %v937_v28 }
 0x1ba   : > { %v505_v31 = vmul.f32 0.1, %v848_v29 }
 0x1bb   : > { %v506_v34 = vmul.f32 0.1, %v849_v30 }
 0x1bc   : > { %v507_v35 = vsel %vm497_vm14, %v493_v21, %v505_v31 }
 0x1bd   : > { %567 = vst [vmem:[#allocation2 + $0x20] sm:$0xf] %v507_v35  ;;  %v508_v36 = vsel %vm498_vm15, %v495_v23, %v506_v34  ;;  %523 = vrot.lane.b32.xlu0 %v507_v35, %s1039_s12  ;;  %549 = vrot.lane.b32.xlu1 %v507_v35, %s1040_s14 }
 0x1be   : > { %568 = vst [vmem:[#allocation2 + $0x28] sm:$0xf] %v508_v36 }
 0x1c1   : > { %511 = vrot.lane.b32.xlu0 %v507_v35, %s1041_s16  ;;  %569 = vrot.lane.b32.xlu1 %v507_v35, %s1043_s25 }
 0x1c5   : > { %537 = vrot.lane.b32.xlu0 %v507_v35, %s1042_s29  ;;  %551 = vrot.lane.b32.xlu1 %v508_v36, %s1040_s14 }
 0x1c9   : > { %571 = vrot.lane.b32.xlu0 %v508_v36, %s1043_s25  ;;  %525 = vrot.lane.b32.xlu1 %v508_v36, %s1039_s12 }
 0x1cd   : > { %601 = vrot.lane.b32.xlu0 %v508_v36, %s1045_s28  ;;  %513 = vrot.lane.b32.xlu1 %v508_v36, %s1041_s16  ;;  %s859_s16 = sshll.u32 %s1101_s22, 7  ;;  %s1049_s22 = smov [#allocation6]  }
 0x1d1   : > { %599 = vrot.lane.b32.xlu0 %v507_v35, %s1045_s28  ;;  %539 = vrot.lane.b32.xlu1 %v508_v36, %s1042_s29  ;;  %s240_s29 = scalar_lea.vmem [#allocation6], %s843_s17  ;;  %s974_s17 = sshll.u32 %s1049_s22, 4  ;;  %s975_s17 = int_to_ptr.vmem [resolvable:$false] %s974_s17 }
 0x1d2   : > { %s766_s25 = sshll.u32 %s240_s29, 4  ;;  %s976_s10 = scalar_lea.vmem %s975_s17, 256  ;;  %s1367_s25 = int_to_ptr.vmem [resolvable:$true] %s766_s25 }
 0x1d3   : > { %s970_s9 = scalar_lea.vmem %s1367_s25, 128  ;;  %p977_p7 = scmp.lt.s32.totalorder %s1367_s25, %s975_s17 }
 0x1d4   : > { %p971_p6 = scmp.ne.s32.totalorder %s1367_s25, %s970_s9  ;;  %p978_p10 = scmp.lt.s32.totalorder %s976_s10, %s970_s9 }
 0x1d5   : > { %615 = vrot.lane.b32.xlu0 %v508_v36, %s1046_s8  ;;  %589 = vrot.lane.b32.xlu1 %v508_v36, %s1044_s26 }
 0x1d6   : > { %p972_p12 = pnand %p971_p6, %p1431_p11  ;;  %p979_p2 = por %p978_p10, %p977_p7 }
 0x1d8   : > { %p973_p13 = pneg %p972_p12 }
 0x1d9   : > { %639 = vperm.xlu0 %932, %v636_v37   ;;  %587 = vrot.lane.b32.xlu1 %v507_v35, %s1044_s26 }
 0x1da   : > { %p980_p4 = pnand %p979_p2, %p973_p13 }
 0x1dd   : > { %613 = vrot.lane.b32.xlu1 %v507_v35, %s1046_s8  ;;  %s1365_s8 = scalar_lea.hbm %s1414_s5, %s859_s16 }
 0x22f   : > { %v524_v38 = vpop.permute.xlu0 %523  ;;  %v550_v39 = vpop.permute.xlu1 %549 }
 0x230   : > { %v529_v40 = vsel %vm292_vm0, 0.0, %v524_v38  ;;  %v556_v41 = vsel %vm320_vm1, 0.0, %v550_v39 }
 0x231   : > { %v531_v42 = vrot.slane %v529_v40, 4  ;;  %v557_v43 = vsel %vm1227_vm2, %v556_v41, 0.0  ;;  %v625_v41 = vld [vmem:[%s1412_s3] sm:$0xf] }
 0x232   : > { %v561_v44 = vrot.slane %v557_v43, 4 }
 0x233   : > { %535 = vst [vmem:[#allocation2] sm:$0xf0] %v531_v42  ;;  %v512_v45 = vpop.permute.xlu0 %511  ;;  %v570_v46 = vpop.permute.xlu1 %569 }
 0x234   : > { %565 = vst [vmem:[#allocation2 + $0x10] sm:$0xf0] %v561_v44  ;;  %v518_v47 = vsel %vm279_vm3, 0.0, %v512_v45 }
 0x235   : > { %v519_v48 = vsel %vm1227_vm2, %v518_v47, 0.0 }
 0x236   : > { %521 = vst [vmem:[#allocation2] sm:$0xf] %v519_v48 }
 0x237   : > { %v538_v49 = vpop.permute.xlu0 %537  ;;  %v552_v50 = vpop.permute.xlu1 %551 }
 0x238   : > { %v544_v51 = vsel %vm307_vm5, 0.0, %v538_v49  ;;  %v553_v52 = vsel %vm320_vm1, %v550_v39, %v552_v50 }
 0x239   : > { %v545_v53 = vsel %vm1249_vm6, %v544_v51, 0.0  ;;  %v558_v54 = vsel %vm1239_vm4, %v553_v52, 0.0 }
 0x23a   : > { %547 = vst [vmem:[#allocation2 + $0x10] sm:$0xf] %v545_v53  ;;  %v562_v55 = vrot.slane %v558_v54, 4 }
 0x23b   : > { %v572_v56 = vpop.permute.xlu0 %571  ;;  %v526_v57 = vpop.permute.xlu1 %525 }
 0x23c   : > { %566 = vst [vmem:[#allocation2 + $0x18] sm:$0xf0] %v562_v55  ;;  %v573_v58 = vsel %vm342_vm8, %v570_v46, %v572_v56  ;;  %v576_v59 = vsel %vm342_vm8, %v572_v56, 0.0  ;;  %v527_v60 = vsel %vm292_vm0, %v524_v38, %v526_v57 }
 0x23d   : > { %v577_v61 = vsel %vm1249_vm6, %v573_v58, 0.0  ;;  %v578_v62 = vsel %vm1253_vm7, %v576_v59, 0.0  ;;  %v532_v63 = vrot.slane %v527_v60, 4  ;;  %v626_v30 = vld [vmem:[#allocation2] sm:$0xff] }
 0x23e   : > { %v581_v1 = vrot.slane %v577_v61, 4  ;;  %v582_v2 = vrot.slane %v578_v62, 4 }
 0x23f   : > { %536 = vst [vmem:[#allocation2 + $0x8] sm:$0xf0] %v532_v63  ;;  %v602_v3 = vpop.permute.xlu0 %601  ;;  %v514_v4 = vpop.permute.xlu1 %513 }
 0x240   : > { %585 = vst [vmem:[#allocation2 + $0x20] sm:$0xf0] %v581_v1  ;;  %586 = vst [vmem:[#allocation2 + $0x28] sm:$0xf0] %v582_v2  ;;  %v605_v5 = vsel %vm374_vm10, %v602_v3, 0.0  ;;  %v515_v6 = vsel %vm279_vm3, %v512_v45, %v514_v4 }
 0x241   : > { %v608_v7 = vrot.slane %v605_v5, 4  ;;  %v520_v9 = vsel %vm1239_vm4, %v515_v6, 0.0  ;;  %v628_v25 = vld [vmem:[#allocation2 + $0x10] sm:$0xff] }
 0x242   : > { %522 = vst [vmem:[#allocation2 + $0x8] sm:$0xf] %v520_v9  ;;  %v870_v33 = vpack.c.bf16 %v628_v25, %v626_v30 }
 0x243   : > { %612 = vst [vmem:[#allocation2 + $0x38] sm:$0xf0] %v608_v7  ;;  %v600_v10 = vpop.permute.xlu0 %599  ;;  %v540_v11 = vpop.permute.xlu1 %539 }
 0x244   : > { %v603_v12 = vsel %vm374_vm10, %v600_v10, %v602_v3  ;;  %v541_v13 = vsel %vm307_vm5, %v538_v49, %v540_v11 }
 0x245   : > { %v607_v14 = vrot.slane %v603_v12, 4  ;;  %v546_v15 = vsel %vm1253_vm7, %v541_v13, 0.0 }
 0x246   : > { %548 = vst [vmem:[#allocation2 + $0x18] sm:$0xf] %v546_v15 }
 0x247   : > { %611 = vst [vmem:[#allocation2 + $0x30] sm:$0xf0] %v607_v14  ;;  %v616_v16 = vpop.permute.xlu0 %615  ;;  %v590_v17 = vpop.permute.xlu1 %589  ;;  %v631_v35 = vld [vmem:[#allocation2 + $0x28] sm:$0xff]  ;;  %v630_v8 = vld [vmem:[#allocation2 + $0x20] sm:$0xff] }
 0x248   : > { %v620_v18 = vsel %vm389_vm11, %v616_v16, 0.0  ;;  %v594_v19 = vsel %vm361_vm9, %v590_v17, 0.0 }
 0x249   : > { %v622_v20 = vsel %vm1253_vm7, %v620_v18, 0.0  ;;  %v596_v21 = vsel %vm1239_vm4, %v594_v19, 0.0  ;;  %v627_v27 = vld [vmem:[#allocation2 + $0x8] sm:$0xff] }
 0x24a   : > { %624 = vst [vmem:[#allocation2 + $0x48] sm:$0xf] %v622_v20  ;;  %598 = vst [vmem:[#allocation2 + $0x38] sm:$0xf] %v596_v21 }
 0x24b   : > { %v588_v22 = vpop.permute.xlu1 %587 }
 0x24c   : > { %v591_v23 = vsel %vm361_vm9, %v588_v22, %v590_v17 }
 0x24d   : > { %v595_v26 = vsel %vm1227_vm2, %v591_v23, 0.0  ;;  %v629_v28 = vld [vmem:[#allocation2 + $0x18] sm:$0xff] }
 0x24e   : > { %597 = vst [vmem:[#allocation2 + $0x30] sm:$0xf] %v595_v26  ;;  %v868_v29 = vpack.c.bf16 %v629_v28, %v627_v27 }
 0x24f   : > { %v614_v31 = vpop.permute.xlu1 %613 }
 0x250   : > { %v617_v34 = vsel %vm389_vm11, %v614_v31, %v616_v16  ;;  %869 = vmatprep.subr.bf16.mxu1 %v868_v29 }
 0x251   : > { %v621_v24 = vsel %vm1249_vm6, %v617_v34, 0.0  ;;  %871 = vmatpush1.bf16.msra.mxu1 %v870_v33  ;;  %v633_v36 = vld [vmem:[#allocation2 + $0x38] sm:$0xff]  ;;  %v635_v40 = vld [vmem:[#allocation2 + $0x48] sm:$0xf] }
 0x252   : > { %623 = vst [vmem:[#allocation2 + $0x40] sm:$0xf] %v621_v24  ;;  %v872_v37 = vpack.c.bf16 %v633_v36, %v631_v35 }
 0x254   : > { %873 = vmatprep.subr.bf16.mxu1 %v872_v37 }
 0x255   : > { %v632_v38 = vld [vmem:[#allocation2 + $0x30] sm:$0xff] }
 0x256   : > { %v874_v39 = vpack.c.bf16 %v632_v38, %v630_v8 }
 0x258   : > { %875 = vmatpush1.bf16.msra.mxu1 %v874_v39  ;;  %v640_v32 = vpop.permute.xlu0 %639 }
 0x259   : > { %850 = vmatprep.subr.msk.mxu1 %vm419_vm12, %v635_v40  ;;  %v634_v42 = vld [vmem:[#allocation2 + $0x40] sm:$0xf] }
 0x25c   : > { %851 = vmatpush1.msk.msra.mxu1 %vm419_vm12, %v634_v42 }
 0x25d   : > { %852 = vmatmul.mubr.msk.f32.vlgmr.msra.gmra.mrb[0].mxu1 %vm415_vm13, %v625_v41 }
 0x330   : > { %v717_v43 = vpop.f32.mrb[0].mxu1 }
 0x331   : > { %v718_v44 = vadd.f32 %v717_v43, %v640_v32  ;;  %v719_v45 = vpop.f32.mrb[1].mxu1 }
 0x332   : > { %v720_v46 = vadd.f32 %v719_v45, %v640_v32 }
 0x333   : > { %v722_v47 = vsel %vm419_vm12, %v718_v44, 0.0 }
 0x334   : > { %v723_v48 = vsel %vm419_vm12, %v720_v46, 0.0 }
 0x335   : > { %v724_v49 = vadd.f32 %v723_v48, %v722_v47 }
 0x337   : > { %725 = vadd.xlane.f32.xlu1 %v724_v49 }
 0x3c4   : > { %v726_v50 = vpop.xlane.xlu1 %725 }
 0x3c5   : > { %v728_v51 = vmul.f32 0.00390625, %v726_v50 }
 0x3c7   : > { %v729_v52 = vsub.f32 %v718_v44, %v728_v51  ;;  %v730_v53 = vsub.f32 %v720_v46, %v728_v51 }
 0x3c9   : > { %v731_v54 = vmul.f32 %v729_v52, %v729_v52  ;;  %v732_v55 = vmul.f32 %v730_v53, %v730_v53 }
 0x3cb   : > { %v733_v56 = vsel %vm419_vm12, %v731_v54, 0.0  ;;  %v734_v57 = vsel %vm419_vm12, %v732_v55, 0.0 }
 0x3cc   : > { %v735_v58 = vadd.f32 %v734_v57, %v733_v56 }
 0x3ce   : > { %736 = vadd.xlane.f32.xlu0 %v735_v58 }
 0x45b   : > { %v737_v59 = vpop.xlane.xlu0 %736 }
 0x45c   : > { %v738_v60 = vmul.f32 0.00390625, %v737_v59 }
 0x45e   : > { %v739_v61 = vadd.f32 1e-05, %v738_v60 }
 0x460   : > { %938 = vrsqrt.f32 %v739_v61 }
 0x46a   : > { %v939_v62 = vpop.eup %938 }
 0x46b   : > { %v741_v63 = vmul.f32 %v939_v62, %v729_v52  ;;  %v742_v1 = vmul.f32 %v939_v62, %v730_v53 }
 0x46d   : > { %v743_v2 = vmax.f32 %v741_v63, 0.0  ;;  %v744_v3 = vmax.f32 %v742_v1, 0.0 }
 0x46f   : > { %v747_v4 = vcombine.low %v743_v2, %v744_v3 }
 0x471   : > { %v749_v5 = vadd.f32 %v747_v4, %v1195_v0 }
 0x473   : > { %750 = vst [vmem:[%s240_s29] sm:$0xff] %v749_v5 }
 0x474   : > { %983 = shalt.err (!%p980_p4)
}
 0x475   : > { %s984_s13 = scalar_lea.hbm %s1365_s8, 128  ;;  %s988_s15 = scalar_lea.hbm %s1414_s5, 256 }
 0x476   : > { %p985_p5 = scmp.ne.s32.totalorder %s1365_s8, %s984_s13  ;;  %p989_p0 = scmp.lt.u32.totalorder %s1365_s8, %s1414_s5 }
 0x477   : > { %p990_p1 = scmp.lt.u32.totalorder %s988_s15, %s984_s13  ;;  %p992_p6 = scmp.lt.u32.totalorder %s984_s13, %s1365_s8 }
 0x478   : > { %p986_p8 = pnand %p985_p5, %p1431_p11 }
 0x479   : > { %p991_p3 = por %p990_p1, %p989_p0 }
 0x47a   : > { %p987_p9 = pneg %p986_p8 }
 0x47b   : > { %p993_p12 = por %p992_p6, %p991_p3 }
 0x47d   : > { %p994_p13 = pnand %p993_p12, %p987_p9 }
 0x47f   : > { %997 = shalt.err (!%p994_p13)
}
 0x480   : > { %878 = dma.vmem_to_hbm [thread:$0]  (%p1431_p11), %s1367_s25, 128, %s1365_s8, %s752_s7  }
 0x481 PF: > { %s778_s16 = sand.u32 1, %s1024_s18   ;;  %p1432_p7 = scmp.ne.s32.totalorder %s1419_s6, 0 }
 0x482   : > { %p1433_p10 = scmp.ge.s32.totalorder %s1036_s21, 2  ;;  %s779_s29 = scalar_lea.sflag [#allocation5], %s778_s16 }
 0x484   : > { %p885_p2 = pnand %p1433_p10, %p1432_p7 }
 0x486   : > { %1019 = dma.done.wait (!%p885_p2), %s779_s29, 128  }
 0x487   : > { %1021 = vsyncadd (!%p885_p2), %s779_s29, 4294967168  ;;  %p18_p4 = scmp.ge.s32.totalorder %s1105_s24, 4   ;;  %s1434_s18 = smov %s1028_s19 }
 0x488   : > { %s1435_s19 = smov %s1032_s20  ;;  %s1436_s20 = smov %s1117_s27 }
 0x489   : > { %s1437_s21 = smov %s1105_s24  ;;  %20 = sbr.rel (!%p18_p4) target bundleno = 5 (0x5), region = 85 }
 0x490   :  { %784 = vsyncpa [#allocation4], 1 }
 0x491   :  { %786 = vsyncpa [#allocation4 + $0x1], 1 }
 0x492   :  { %787 = vsyncpa [#allocation5], 1 }
 0x493   :  { %789 = vsyncpa [#allocation5 + $0x1], 1 }

</bundles_post_ra>
